<compile_context>
chip_gen: v5e
topology: v5e:2x2
jax: 0.10.0
libtpu: 0.0.40
codegen_flags: <defaults>
</compile_context>

<pallas_src>
import functools

import jax
import jax.numpy as jnp
from jax.experimental import pallas as pl
from jax.experimental.pallas import tpu as pltpu

_MIB = 1024 * 1024


def _round_up(v, m):
    return ((v + m - 1) // m) * m


def _vmem_capacity_bytes():
    try:
        cap = int(pltpu.get_tpu_info().vmem_capacity_bytes)
        if cap > 0:
            return cap
    except Exception:
        pass
    return 64 * _MIB  # conservative fallback (v7x-sized VMEM)


def _pad2(arr, rows, cols):
    if rows == 0 and cols == 0:
        return arr
    return jnp.pad(arr, ((0, rows), (0, cols)))


def _pow(x, e):
    if e == 1.0:
        return x
    if e == 2.0:
        return x * x
    return x ** e


def _resident_spec(shape, index_map):
    """Grid-invariant input: request single buffering (saves one VMEM copy)."""
    if hasattr(pl, "Buffered"):
        try:
            return pl.BlockSpec(shape, index_map, pipeline_mode=pl.Buffered(1))
        except TypeError:
            pass
    return pl.BlockSpec(shape, index_map)


# ----------------------------------------------------------------------------
# Kernels
# ----------------------------------------------------------------------------
def _gene_resident_kernel(a_ref, hill_ref, x_ref, o_ref, *, b, f_exp):
    # a_ref:    (tm, N)  row tile of A            (streamed from HBM)
    # hill_ref: (N, Mp)  Hill(x), A's dtype       (VMEM resident, single buffer)
    # x_ref:    (tm, Mp) row tile of x            (streamed, for the decay term)
    # o_ref:    (tm, Mp) output row tile
    ax = jnp.dot(a_ref[...], hill_ref[...], preferred_element_type=jnp.float32)
    decay = _pow(x_ref[...].astype(jnp.float32), f_exp)
    o_ref[...] = (ax - b * decay).astype(o_ref.dtype)


def _gene_ktiled_kernel(a_ref, hill_ref, x_ref, o_ref, acc_ref, *, b, f_exp):
    # a_ref: (tm, tk) tile of A; hill_ref: (tk, Mp); x_ref/o_ref: (tm, Mp)
    k = pl.program_id(1)

    @pl.when(k == 0)
    def _():
        acc_ref[...] = jnp.zeros_like(acc_ref)

    acc_ref[...] += jnp.dot(a_ref[...], hill_ref[...],
                            preferred_element_type=jnp.float32)

    @pl.when(k == pl.num_programs(1) - 1)
    def _():
        decay = _pow(x_ref[...].astype(jnp.float32), f_exp)
        o_ref[...] = (acc_ref[...] - b * decay).astype(o_ref.dtype)


# ----------------------------------------------------------------------------
# Wrapper
# ----------------------------------------------------------------------------
def gene_dynamics(A, x, b=1.0, f=1, h=2, *, tm=None, tk=None,
                  a_compute_dtype=None, force_k_tiled=False):
    """Pallas equivalent of GeneDynamics.forward(t, x) for a dense adjacency A.

    a_compute_dtype: optionally cast A (and the Hill RHS) to e.g. jnp.bfloat16
    to halve the A stream on this HBM-bound kernel; default keeps A's dtype
    (exact semantics).
    """
    N, M = x.shape
    assert A.shape == (N, N), "A must be (N, N) and x (N, M)"
    assert jnp.issubdtype(A.dtype, jnp.floating), (
        "A must be a floating dtype (quantized adjacencies need explicit dequant)")

    b = float(b)
    f_exp = float(f)   # fractional exponents supported (no int truncation)
    h_exp = float(h)

    if a_compute_dtype is not None:
        A = A.astype(a_compute_dtype)
    a_dtype = A.dtype

    # Hill nonlinearity hoisted out of the kernel (one XLA pass over x),
    # cast to A's dtype so the MXU takes its native path.
    xh = _pow(x.astype(jnp.float32), h_exp)
    hill = (xh / (xh + 1.0)).astype(a_dtype)

    # Lane-dense state dimension (zero columns are exact and sliced off).
    Mp = _round_up(max(M, 128), 128)
    pad_m = Mp - M

    itemA = jnp.dtype(a_dtype).itemsize
    itemX = jnp.dtype(x.dtype).itemsize

    vmem_cap = _vmem_capacity_bytes()
    budget = int(vmem_cap * 0.85)

    tm_candidates = [int(tm)] if tm is not None else [256, 128]
    tk_candidates = [int(tk)] if tk is not None else [512, 256, 128]

    # ---------------- resident-RHS path ----------------
    resident = None
    if not force_k_tiled:
        for cand in tm_candidates:
            tm_eff = min(cand, N)
            need = (N * Mp * itemA              # resident hill (single buffered)
                    + 2 * tm_eff * N * itemA    # A row tile, double buffered
                    + 4 * tm_eff * Mp * itemX)  # x + out tiles, double buffered
            if need <= budget:
                resident = (tm_eff, need)
                break

    if resident is not None:
        tm_eff, need = resident
        Np = _round_up(N, tm_eff)

        A_p = _pad2(A, Np - N, 0)
        hill_p = _pad2(hill, 0, pad_m)
        x_p = _pad2(x, Np - N, pad_m)

        vmem_limit = int(min(max(int(need * 1.25) + 4 * _MIB, 32 * _MIB),
                             int(vmem_cap * 0.9)))
        cost = pl.CostEstimate(
            flops=2 * Np * N * Mp + 3 * Np * Mp,
            transcendentals=0 if f_exp in (1.0, 2.0) else Np * Mp,
            bytes_accessed=Np * N * itemA + N * Mp * itemA + 2 * Np * Mp * itemX,
        )

        out_p = pl.pallas_call(
            functools.partial(_gene_resident_kernel, b=b, f_exp=f_exp),
            out_shape=jax.ShapeDtypeStruct((Np, Mp), x.dtype),
            grid=(Np // tm_eff,),
            in_specs=[
                pl.BlockSpec((tm_eff, N), lambda i: (i, 0)),     # A row tile
                _resident_spec((N, Mp), lambda i: (0, 0)),       # resident hill
                pl.BlockSpec((tm_eff, Mp), lambda i: (i, 0)),    # x row tile
            ],
            out_specs=pl.BlockSpec((tm_eff, Mp), lambda i: (i, 0)),
            compiler_params=pltpu.CompilerParams(
                dimension_semantics=("parallel",),
                vmem_limit_bytes=vmem_limit),
            cost_estimate=cost,
        )(A_p, hill_p, x_p)

    # ---------------- K-tiled fallback path ----------------
    else:
        chosen = None
        for cand_m in tm_candidates:
            for cand_k in tk_candidates:
                tm_eff = min(cand_m, N)
                tk_eff = min(cand_k, N)
                need = (2 * tm_eff * tk_eff * itemA      # A tile
                        + 2 * tk_eff * Mp * itemA        # hill K tile
                        + 4 * tm_eff * Mp * itemX        # x + out tiles
                        + tm_eff * Mp * 4)               # f32 accumulator
                if need <= budget:
                    chosen = (tm_eff, tk_eff, need)
                    break
            if chosen is not None:
                break
        if chosen is None:
            tm_eff = min(tm_candidates[-1], N)
            tk_eff = min(tk_candidates[-1], N)
            need = (2 * tm_eff * tk_eff * itemA + 2 * tk_eff * Mp * itemA
                    + 4 * tm_eff * Mp * itemX + tm_eff * Mp * 4)
        else:
            tm_eff, tk_eff, need = chosen

        Np = _round_up(N, tm_eff)
        Nk = _round_up(N, tk_eff)

        A_p = _pad2(A, Np - N, Nk - N)
        hill_p = _pad2(hill, Nk - N, pad_m)
        x_p = _pad2(x, Np - N, pad_m)

        vmem_limit = int(min(max(int(need * 1.25) + 4 * _MIB, 32 * _MIB),
                             int(vmem_cap * 0.9)))
        cost = pl.CostEstimate(
            flops=2 * Np * Nk * Mp + 3 * Np * Mp,
            transcendentals=0 if f_exp in (1.0, 2.0) else Np * Mp,
            bytes_accessed=(Np * Nk * itemA
                            + (Np // tm_eff) * Nk * Mp * itemA
                            + 2 * Np * Mp * itemX),
        )

        out_p = pl.pallas_call(
            functools.partial(_gene_ktiled_kernel, b=b, f_exp=f_exp),
            out_shape=jax.ShapeDtypeStruct((Np, Mp), x.dtype),
            grid=(Np // tm_eff, Nk // tk_eff),
            in_specs=[
                pl.BlockSpec((tm_eff, tk_eff), lambda i, k: (i, k)),  # A tile
                pl.BlockSpec((tk_eff, Mp), lambda i, k: (k, 0)),      # hill K tile
                pl.BlockSpec((tm_eff, Mp), lambda i, k: (i, 0)),      # x row tile
            ],
            out_specs=pl.BlockSpec((tm_eff, Mp), lambda i, k: (i, 0)),
            scratch_shapes=[pltpu.VMEM((tm_eff, Mp), jnp.float32)],
            compiler_params=pltpu.CompilerParams(
                dimension_semantics=("parallel", "arbitrary"),
                vmem_limit_bytes=vmem_limit),
            cost_estimate=cost,
        )(A_p, hill_p, x_p)

    return out_p[:N, :M]


def gene_dynamics_ref(A, x, b=1.0, f=1, h=2):
    xh = x ** h
    return -b * (x ** f) + A @ (xh / (xh + 1.0))


# TODO(synk): the torch.sparse.mm branch (sparse adjacency) is not translated;
# only the dense torch.mm path is implemented here.


if __name__ == "__main__":
    key = jax.random.PRNGKey(0)
    k_a1, k_x1, k_a2, k_x2 = jax.random.split(key, 4)

    b, f, h = 1.0, 1, 2

    # --- Test 1: resident-RHS path (128 nodes, 8 state columns).
    N1, M1 = 128, 8
    a1 = jax.random.uniform(k_a1, (N1, N1), dtype=jnp.float32)
    A1 = (a1 + a1.T) * 0.5
    A1 = A1 * (1.0 - jnp.eye(N1, dtype=jnp.float32))   # symmetric, no self-loops
    x1 = jax.random.uniform(k_x1, (N1, M1), dtype=jnp.float32) + 0.1

    out1 = jax.block_until_ready(gene_dynamics(A1, x1, b=b, f=f, h=h))
    ref1 = gene_dynamics_ref(A1, x1, b=b, f=f, h=h)
    assert out1.shape == (N1, M1)
    assert jnp.allclose(out1, ref1, atol=1e-4, rtol=1e-4)

    # --- Test 2: K-tiled fallback path (forced), with row/K zero-padding
    #             exercised (N=200 is not a tile multiple).
    N2, M2 = 200, 8
    a2 = jax.random.uniform(k_a2, (N2, N2), dtype=jnp.float32)
    A2 = (a2 + a2.T) * 0.5
    A2 = A2 * (1.0 - jnp.eye(N2, dtype=jnp.float32))
    x2 = jax.random.uniform(k_x2, (N2, M2), dtype=jnp.float32) + 0.1

    out2 = jax.block_until_ready(
        gene_dynamics(A2, x2, b=b, f=f, h=h, tm=128, tk=128, force_k_tiled=True))
    ref2 = gene_dynamics_ref(A2, x2, b=b, f=f, h=h)
    assert out2.shape == (N2, M2)
    assert jnp.allclose(out2, ref2, atol=1e-4, rtol=1e-4)

    print("KERNEL_OK")
</pallas_src>

<mosaic_0001>
module attributes {stable_mosaic.version = 11 : i64} {
  func.func @_gene_resident_kernel(%arg0: i32, %arg1: memref<128x128xf32, #tpu.memory_space<vmem>>, %arg2: memref<128x128xf32, #tpu.memory_space<vmem>>, %arg3: memref<128x128xf32, #tpu.memory_space<vmem>>, %arg4: memref<128x128xf32, #tpu.memory_space<vmem>>) attributes {dimension_semantics = [#tpu.dimension_semantics<parallel>], iteration_bounds = array<i64: 1>, scalar_prefetch = 0 : i64, scratch_operands = 0 : i64, tpu.core_type = #tpu.core_type<tc>, window_params = [{transform_indices = @transform_0, window_bounds = array<i64: 128, 128>}, {pipeline_mode = #tpu.pipeline_mode<synchronous>, transform_indices = @transform_1, window_bounds = array<i64: 128, 128>}, {transform_indices = @transform_2, window_bounds = array<i64: 128, 128>}, {transform_indices = @transform_3, window_bounds = array<i64: 128, 128>}]} {
    %c0 = arith.constant 0 : index
    %c0_0 = arith.constant 0 : index
    %0 = vector.load %arg1[%c0, %c0_0] : memref<128x128xf32, #tpu.memory_space<vmem>>, vector<128x128xf32>
    %c0_1 = arith.constant 0 : index
    %c0_2 = arith.constant 0 : index
    %1 = vector.load %arg2[%c0_1, %c0_2] : memref<128x128xf32, #tpu.memory_space<vmem>>, vector<128x128xf32>
    %cst = arith.constant dense<0.000000e+00> : vector<128x128xf32>
    %2 = tpu.matmul %0, %1, %cst {dimension_numbers = #tpu.dot_dimension_numbers<[1], [0], [0], [1], [0, 0, 1, 1], [], []>} : vector<128x128xf32>, vector<128x128xf32>, vector<128x128xf32> -> vector<128x128xf32>
    %c0_3 = arith.constant 0 : index
    %c0_4 = arith.constant 0 : index
    %3 = vector.load %arg3[%c0_3, %c0_4] : memref<128x128xf32, #tpu.memory_space<vmem>>, vector<128x128xf32>
    %cst_5 = arith.constant 1.000000e+00 : f32
    %4 = vector.broadcast %cst_5 : f32 to vector<128x128xf32>
    %5 = arith.mulf %4, %3 : vector<128x128xf32>
    %6 = arith.subf %2, %5 : vector<128x128xf32>
    %c0_6 = arith.constant 0 : index
    %c0_7 = arith.constant 0 : index
    %7 = vector.load %arg4[%c0_6, %c0_7] : memref<128x128xf32, #tpu.memory_space<vmem>>, vector<128x128xf32>
    tpu.vector_store %arg4[%c0_6, %c0_7], %6 {strides = array<i32>} : memref<128x128xf32, #tpu.memory_space<vmem>>, vector<128x128xf32>,
    return
  }
  func.func @transform_0(%arg0: i32) -> (i32, i32) {
    %c0_i32 = arith.constant 0 : i32
    %c0_i32_0 = arith.constant 0 : i32
    return %arg0, %c0_i32 : i32, i32
  }
  func.func @transform_1(%arg0: i32) -> (i32, i32) {
    %c0_i32 = arith.constant 0 : i32
    %c0_i32_0 = arith.constant 0 : i32
    %c0_i32_1 = arith.constant 0 : i32
    return %c0_i32, %c0_i32_0 : i32, i32
  }
  func.func @transform_2(%arg0: i32) -> (i32, i32) {
    %c0_i32 = arith.constant 0 : i32
    %c0_i32_0 = arith.constant 0 : i32
    return %arg0, %c0_i32 : i32, i32
  }
  func.func @transform_3(%arg0: i32) -> (i32, i32) {
    %c0_i32 = arith.constant 0 : i32
    %c0_i32_0 = arith.constant 0 : i32
    return %arg0, %c0_i32 : i32, i32
  }
}

</mosaic_0001>

<bundles_post_ra>
// kernel: tpu_custom_call.1
= control target key start
LH: loop header
LB: loop body
LE: loop exit
PB: predicated region body
PF: predicated region fallthrough
CT: control target
= control target key end

     0   :  { %8 = vsyncpa [#allocation3], 0  ;;  %s433_s0 = inlined_call_operand.hbm [shape: f32[128,128], index: 0, kind: input, shape index: {}]   ;;  %s434_s1 = inlined_call_operand.hbm [shape: f32[128,128], index: 1, kind: input, shape index: {}]   ;;  %s435_s2 = inlined_call_operand.hbm [shape: f32[128,128], index: 2, kind: input, shape index: {}]   ;;  %s436_s3 = inlined_call_operand.hbm [shape: f32[128,128], index: 3, kind: output, shape index: {}]  }
   0x1   :  { %9 = vsyncpa [#allocation6], 0 }
   0x2   :  { %10 = vsyncpa [#allocation4], 0  ;;  %s28_s14 = sshll.u32 %s434_s1, 4  ;;  %s383_s15 = smov [#allocation5]   ;;  %s29_s14 = int_to_ptr.hbm [resolvable:$true] %s28_s14 }
   0x3   :  { %s30_s16 = sshll.u32 %s383_s15, 4  ;;  %s15_s19 = sshll.u32 %s433_s0, 4  ;;  %s31_s16 = int_to_ptr.vmem [resolvable:$true] %s30_s16  ;;  %s16_s19 = int_to_ptr.hbm [resolvable:$true] %s15_s19 }
   0x4   :  { %s384_s20 = smov 128   ;;  %s385_s21 = smov 8  }
   0x5   :  { %36 = dma.hbm_to_vmem [thread:$0]  %s29_s14, 2048, %s31_s16, [#allocation6], %s384_s20, %s384_s20, %s385_s21  }
   0x6   :  { %s386_s22 = smov [#allocation2]   ;;  %s41_s1 = sshll.u32 %s435_s2, 4  ;;  %s42_s1 = int_to_ptr.hbm [resolvable:$true] %s41_s1 }
   0x7   :  { %s17_s23 = sshll.u32 %s386_s22, 4  ;;  %s387_s0 = smov [#allocation7]   ;;  %s18_s23 = int_to_ptr.vmem [resolvable:$true] %s17_s23 }
   0x8   :  { %23 = dma.hbm_to_vmem [thread:$0]  %s16_s19, 2048, %s18_s23, [#allocation3], %s384_s20, %s384_s20, %s385_s21  }
   0x9   :  { %s43_s26 = sshll.u32 %s387_s0, 4  ;;  %s44_s26 = int_to_ptr.vmem [resolvable:$true] %s43_s26 }
   0xa   :  { %49 = dma.hbm_to_vmem [thread:$0]  %s42_s1, 2048, %s44_s26, [#allocation6], %s384_s20, %s384_s20, %s385_s21  }
   0xb   :  { %377 = dma.done.wait [#allocation3], 2048  }
   0xc   :  { %378 = vsyncadd [#allocation3], 4294965248 }
   0xd   :  { %379 = dma.done.wait [#allocation6], 4096  }
   0xe   :  { %380 = vsyncadd [#allocation6], 4294963200  ;;  %v93_v0 = vld [vmem:[#allocation5 + $0x78] sm:$0xff]  ;;  %v92_v1 = vld [vmem:[#allocation5 + $0x70] sm:$0xff]  ;;  %s388_s2 = smov [#allocation8]   ;;  %s213_s30 = sshll.u32 %s436_s3, 4  ;;  %s214_s30 = int_to_ptr.hbm [resolvable:$true] %s213_s30 }
   0xf   :  { %228 = vmatpush.msra.mxu2 %v93_v0  ;;  %229 = vmatpush.msra.mxu3 %v93_v0  ;;  %v91_v2 = vld [vmem:[#allocation5 + $0x68] sm:$0xff]  ;;  %v90_v3 = vld [vmem:[#allocation5 + $0x60] sm:$0xff]  ;;  %v89_v4 = vld [vmem:[#allocation5 + $0x58] sm:$0xff]  ;;  %s211_s27 = sshll.u32 %s388_s2, 4  ;;  %s212_s27 = int_to_ptr.vmem [resolvable:$true] %s211_s27 }
  0x10   :  { %94 = vmatpush.msra.mxu0 %v93_v0  ;;  %227 = vmatpush.msra.mxu1 %v93_v0  ;;  %v88_v5 = vld [vmem:[#allocation5 + $0x50] sm:$0xff]  ;;  %v87_v6 = vld [vmem:[#allocation5 + $0x48] sm:$0xff]  ;;  %v86_v7 = vld [vmem:[#allocation5 + $0x40] sm:$0xff] }
  0x11   :  { %231 = vmatpush.msra.mxu2 %v92_v1  ;;  %232 = vmatpush.msra.mxu3 %v92_v1  ;;  %v85_v8 = vld [vmem:[#allocation5 + $0x38] sm:$0xff]  ;;  %v84_v9 = vld [vmem:[#allocation5 + $0x30] sm:$0xff]  ;;  %v83_v10 = vld [vmem:[#allocation5 + $0x28] sm:$0xff] }
  0x12   :  { %95 = vmatpush.msra.mxu0 %v92_v1  ;;  %230 = vmatpush.msra.mxu1 %v92_v1  ;;  %v82_v11 = vld [vmem:[#allocation5 + $0x20] sm:$0xff]  ;;  %v81_v12 = vld [vmem:[#allocation5 + $0x18] sm:$0xff]  ;;  %v80_v13 = vld [vmem:[#allocation5 + $0x10] sm:$0xff] }
  0x13   :  { %234 = vmatpush.msra.mxu2 %v91_v2  ;;  %235 = vmatpush.msra.mxu3 %v91_v2  ;;  %v79_v14 = vld [vmem:[#allocation5 + $0x8] sm:$0xff]  ;;  %v78_v15 = vld [vmem:[#allocation5] sm:$0xff]  ;;  %v72_v24 = vld [vmem:[#allocation2 + $0x50] sm:$0xff] }
  0x14   :  { %96 = vmatpush.msra.mxu0 %v91_v2  ;;  %233 = vmatpush.msra.mxu1 %v91_v2  ;;  %v70_v16 = vld [vmem:[#allocation2 + $0x40] sm:$0xff]  ;;  %v71_v20 = vld [vmem:[#allocation2 + $0x48] sm:$0xff]  ;;  %v76_v25 = vld [vmem:[#allocation2 + $0x70] sm:$0xff] }
  0x15   :  { %237 = vmatpush.msra.mxu2 %v90_v3  ;;  %238 = vmatpush.msra.mxu3 %v90_v3  ;;  %v74_v17 = vld [vmem:[#allocation2 + $0x60] sm:$0xff]  ;;  %v75_v21 = vld [vmem:[#allocation2 + $0x68] sm:$0xff]  ;;  %v64_v26 = vld [vmem:[#allocation2 + $0x10] sm:$0xff] }
  0x16   :  { %97 = vmatpush.msra.mxu0 %v90_v3  ;;  %236 = vmatpush.msra.mxu1 %v90_v3  ;;  %v62_v18 = vld [vmem:[#allocation2] sm:$0xff]  ;;  %v63_v22 = vld [vmem:[#allocation2 + $0x8] sm:$0xff]  ;;  %v68_v27 = vld [vmem:[#allocation2 + $0x30] sm:$0xff] }
  0x17   :  { %240 = vmatpush.msra.mxu2 %v89_v4  ;;  %241 = vmatpush.msra.mxu3 %v89_v4  ;;  %v66_v19 = vld [vmem:[#allocation2 + $0x20] sm:$0xff]  ;;  %v67_v23 = vld [vmem:[#allocation2 + $0x28] sm:$0xff]  ;;  %v73_v28 = vld [vmem:[#allocation2 + $0x58] sm:$0xff] }
  0x18   :  { %98 = vmatpush.msra.mxu0 %v89_v4  ;;  %239 = vmatpush.msra.mxu1 %v89_v4  ;;  %v77_v29 = vld [vmem:[#allocation2 + $0x78] sm:$0xff]  ;;  %v159_v32 = vld [vmem:[#allocation7] sm:$0xff]  ;;  %v160_v44 = vld [vmem:[#allocation7 + $0x8] sm:$0xff] }
  0x19   :  { %243 = vmatpush.msra.mxu2 %v88_v5  ;;  %244 = vmatpush.msra.mxu3 %v88_v5  ;;  %v65_v30 = vld [vmem:[#allocation2 + $0x18] sm:$0xff]  ;;  %v163_v33 = vld [vmem:[#allocation7 + $0x20] sm:$0xff]  ;;  %v164_v45 = vld [vmem:[#allocation7 + $0x28] sm:$0xff] }
  0x1a   :  { %99 = vmatpush.msra.mxu0 %v88_v5  ;;  %242 = vmatpush.msra.mxu1 %v88_v5  ;;  %v69_v31 = vld [vmem:[#allocation2 + $0x38] sm:$0xff]  ;;  %v167_v38 = vld [vmem:[#allocation7 + $0x40] sm:$0xff]  ;;  %v168_v50 = vld [vmem:[#allocation7 + $0x48] sm:$0xff] }
  0x1b   :  { %246 = vmatpush.msra.mxu2 %v87_v6  ;;  %247 = vmatpush.msra.mxu3 %v87_v6  ;;  %v171_v39 = vld [vmem:[#allocation7 + $0x60] sm:$0xff]  ;;  %v172_v51 = vld [vmem:[#allocation7 + $0x68] sm:$0xff]  ;;  %v161_v56 = vld [vmem:[#allocation7 + $0x10] sm:$0xff] }
  0x1c   :  { %100 = vmatpush.msra.mxu0 %v87_v6  ;;  %245 = vmatpush.msra.mxu1 %v87_v6  ;;  %v165_v57 = vld [vmem:[#allocation7 + $0x30] sm:$0xff]  ;;  %v162_v4 = vld [vmem:[#allocation7 + $0x18] sm:$0xff] }
  0x1d   :  { %249 = vmatpush.msra.mxu2 %v86_v7  ;;  %250 = vmatpush.msra.mxu3 %v86_v7  ;;  %v169_v62 = vld [vmem:[#allocation7 + $0x50] sm:$0xff]  ;;  %v166_v5 = vld [vmem:[#allocation7 + $0x38] sm:$0xff] }
  0x1e   :  { %101 = vmatpush.msra.mxu0 %v86_v7  ;;  %248 = vmatpush.msra.mxu1 %v86_v7  ;;  %v173_v63 = vld [vmem:[#allocation7 + $0x70] sm:$0xff] }
  0x1f   :  { %252 = vmatpush.msra.mxu2 %v85_v8  ;;  %253 = vmatpush.msra.mxu3 %v85_v8 }
  0x20   :  { %102 = vmatpush.msra.mxu0 %v85_v8  ;;  %251 = vmatpush.msra.mxu1 %v85_v8 }
  0x21   :  { %255 = vmatpush.msra.mxu2 %v84_v9  ;;  %256 = vmatpush.msra.mxu3 %v84_v9 }
  0x22   :  { %103 = vmatpush.msra.mxu0 %v84_v9  ;;  %254 = vmatpush.msra.mxu1 %v84_v9 }
  0x23   :  { %258 = vmatpush.msra.mxu2 %v83_v10  ;;  %259 = vmatpush.msra.mxu3 %v83_v10 }
  0x24   :  { %104 = vmatpush.msra.mxu0 %v83_v10  ;;  %257 = vmatpush.msra.mxu1 %v83_v10  ;;  %v170_v10 = vld [vmem:[#allocation7 + $0x58] sm:$0xff] }
  0x25   :  { %261 = vmatpush.msra.mxu2 %v82_v11  ;;  %262 = vmatpush.msra.mxu3 %v82_v11 }
  0x26   :  { %105 = vmatpush.msra.mxu0 %v82_v11  ;;  %260 = vmatpush.msra.mxu1 %v82_v11  ;;  %v174_v11 = vld [vmem:[#allocation7 + $0x78] sm:$0xff] }
  0x27   :  { %264 = vmatpush.msra.mxu2 %v81_v12  ;;  %265 = vmatpush.msra.mxu3 %v81_v12 }
  0x28   :  { %106 = vmatpush.msra.mxu0 %v81_v12  ;;  %263 = vmatpush.msra.mxu1 %v81_v12 }
  0x29   :  { %267 = vmatpush.msra.mxu2 %v80_v13  ;;  %268 = vmatpush.msra.mxu3 %v80_v13 }
  0x2a   :  { %107 = vmatpush.msra.mxu0 %v80_v13  ;;  %266 = vmatpush.msra.mxu1 %v80_v13 }
  0x2b   :  { %270 = vmatpush.msra.mxu2 %v79_v14  ;;  %271 = vmatpush.msra.mxu3 %v79_v14 }
  0x2c   :  { %108 = vmatpush.msra.mxu0 %v79_v14  ;;  %269 = vmatpush.msra.mxu1 %v79_v14 }
  0x2d   :  { %273 = vmatpush.msra.mxu2 %v78_v15  ;;  %274 = vmatpush.msra.mxu3 %v78_v15 }
  0x2e   :  { %134 = vmatmul.f32.vlgmr.msra.gmra.mxu2 %v70_v16  ;;  %146 = vmatmul.f32.vlgmr.msra.gmra.mxu3 %v74_v17 }
  0x2f   :  { %109 = vmatpush.msra.mxu0 %v78_v15  ;;  %272 = vmatpush.msra.mxu1 %v78_v15 }
  0x30   :  { %110 = vmatmul.f32.vlgmr.msra.gmra.mxu0 %v62_v18  ;;  %122 = vmatmul.f32.vlgmr.msra.gmra.mxu1 %v66_v19 }
  0x36   :  { %137 = vmatmul.f32.gmra.mxu2 %v71_v20  ;;  %149 = vmatmul.f32.gmra.mxu3 %v75_v21 }
  0x38   :  { %113 = vmatmul.f32.gmra.mxu0 %v63_v22  ;;  %125 = vmatmul.f32.gmra.mxu1 %v67_v23 }
  0x3e   :  { %140 = vmatmul.f32.gmra.mxu2 %v72_v24  ;;  %152 = vmatmul.f32.gmra.mxu3 %v76_v25 }
  0x40   :  { %116 = vmatmul.f32.gmra.mxu0 %v64_v26  ;;  %128 = vmatmul.f32.gmra.mxu1 %v68_v27 }
  0x46   :  { %143 = vmatmul.f32.gmra.mxu2 %v73_v28  ;;  %155 = vmatmul.f32.gmra.mxu3 %v77_v29 }
  0x48   :  { %119 = vmatmul.f32.gmra.mxu0 %v65_v30  ;;  %131 = vmatmul.f32.gmra.mxu1 %v69_v31 }
  0xad   :  { %v111_v34 = vpop.f32.mrf.mxu0  ;;  %v123_v35 = vpop.f32.mrf.mxu1 }
  0xae   :  { %v175_v36 = vsub.f32 %v111_v34, %v159_v32  ;;  %v179_v37 = vsub.f32 %v123_v35, %v163_v33 }
  0xb0   :  { %191 = vst [vmem:[#allocation8] sm:$0xff] %v175_v36 }
  0xb1   :  { %195 = vst [vmem:[#allocation8 + $0x20] sm:$0xff] %v179_v37  ;;  %v135_v40 = vpop.f32.mrf.mxu2  ;;  %v147_v41 = vpop.f32.mrf.mxu3 }
  0xb2   :  { %v183_v42 = vsub.f32 %v135_v40, %v167_v38  ;;  %v187_v43 = vsub.f32 %v147_v41, %v171_v39 }
  0xb4   :  { %199 = vst [vmem:[#allocation8 + $0x40] sm:$0xff] %v183_v42 }
  0xb5   :  { %203 = vst [vmem:[#allocation8 + $0x60] sm:$0xff] %v187_v43  ;;  %v114_v46 = vpop.f32.mrf.mxu0  ;;  %v126_v47 = vpop.f32.mrf.mxu1 }
  0xb6   :  { %v176_v48 = vsub.f32 %v114_v46, %v160_v44  ;;  %v180_v49 = vsub.f32 %v126_v47, %v164_v45 }
  0xb8   :  { %192 = vst [vmem:[#allocation8 + $0x8] sm:$0xff] %v176_v48 }
  0xb9   :  { %196 = vst [vmem:[#allocation8 + $0x28] sm:$0xff] %v180_v49  ;;  %v138_v52 = vpop.f32.mrf.mxu2  ;;  %v150_v53 = vpop.f32.mrf.mxu3 }
  0xba   :  { %v184_v54 = vsub.f32 %v138_v52, %v168_v50  ;;  %v188_v55 = vsub.f32 %v150_v53, %v172_v51 }
  0xbc   :  { %200 = vst [vmem:[#allocation8 + $0x48] sm:$0xff] %v184_v54 }
  0xbd   :  { %204 = vst [vmem:[#allocation8 + $0x68] sm:$0xff] %v188_v55  ;;  %v117_v58 = vpop.f32.mrf.mxu0  ;;  %v129_v59 = vpop.f32.mrf.mxu1 }
  0xbe   :  { %v177_v60 = vsub.f32 %v117_v58, %v161_v56  ;;  %v181_v61 = vsub.f32 %v129_v59, %v165_v57 }
  0xc0   :  { %193 = vst [vmem:[#allocation8 + $0x10] sm:$0xff] %v177_v60 }
  0xc1   :  { %197 = vst [vmem:[#allocation8 + $0x30] sm:$0xff] %v181_v61  ;;  %v141_v0 = vpop.f32.mrf.mxu2  ;;  %v153_v1 = vpop.f32.mrf.mxu3 }
  0xc2   :  { %v185_v2 = vsub.f32 %v141_v0, %v169_v62  ;;  %v189_v3 = vsub.f32 %v153_v1, %v173_v63 }
  0xc4   :  { %201 = vst [vmem:[#allocation8 + $0x50] sm:$0xff] %v185_v2 }
  0xc5   :  { %205 = vst [vmem:[#allocation8 + $0x70] sm:$0xff] %v189_v3  ;;  %v120_v6 = vpop.f32.mrf.mxu0  ;;  %v132_v7 = vpop.f32.mrf.mxu1 }
  0xc6   :  { %v178_v8 = vsub.f32 %v120_v6, %v162_v4  ;;  %v182_v9 = vsub.f32 %v132_v7, %v166_v5 }
  0xc8   :  { %194 = vst [vmem:[#allocation8 + $0x18] sm:$0xff] %v178_v8 }
  0xc9   :  { %198 = vst [vmem:[#allocation8 + $0x38] sm:$0xff] %v182_v9  ;;  %v144_v12 = vpop.f32.mrf.mxu2  ;;  %v156_v13 = vpop.f32.mrf.mxu3 }
  0xca   :  { %v186_v14 = vsub.f32 %v144_v12, %v170_v10  ;;  %v190_v15 = vsub.f32 %v156_v13, %v174_v11 }
  0xcc   :  { %202 = vst [vmem:[#allocation8 + $0x58] sm:$0xff] %v186_v14 }
  0xcd   :  { %206 = vst [vmem:[#allocation8 + $0x78] sm:$0xff] %v190_v15 }
  0xce   :  { %219 = dma.vmem_to_hbm [thread:$0]  %s212_s27, 2048, %s214_s30, [#allocation4], %s384_s20, %s384_s20, %s385_s21  }
  0xcf   :  { %381 = dma.done.wait [#allocation4], 2048  }
  0xd0   :  { %382 = vsyncadd [#allocation4], 4294965248 }
  0xd1   :  { %224 = vsyncpa [#allocation3], 1 }
  0xd2   :  { %225 = vsyncpa [#allocation6], 1 }
  0xd3   :  { %226 = vsyncpa [#allocation4], 1 }

</bundles_post_ra>
